<compile_context>
chip_gen: v5e
topology: v5e:2x2
jax: 0.10.0
libtpu: 0.0.40
codegen_flags: <defaults>
</compile_context>

<pallas_src>
import functools

import jax
import jax.numpy as jnp
from jax.experimental import pallas as pl
from jax.experimental.pallas import tpu as pltpu


# ---------------------------------------------------------------------------
# Stage 1: K/V projection -> head-major bf16 (B, heads, Nk, dim_head)
# ---------------------------------------------------------------------------
def _kv_proj_kernel(ctx_ref, wk_ref, wv_ref, k_ref, v_ref, *, heads):
    c = ctx_ref[0]                                             # (tk, Dc) bf16
    for h in range(heads):                                     # static unroll
        k_ref[0, h] = jnp.dot(c, wk_ref[h],
                              preferred_element_type=jnp.float32).astype(jnp.bfloat16)
        v_ref[0, h] = jnp.dot(c, wv_ref[h],
                              preferred_element_type=jnp.float32).astype(jnp.bfloat16)


# ---------------------------------------------------------------------------
# Stage 2: fused q-projection + flash attention + output projection
# ---------------------------------------------------------------------------
def _flash_xattn_kernel(x_ref, k_ref, v_ref, wq_ref, wo_ref, bo_ref, o_ref,
                        q_s, m_s, l_s, acc_s, *,
                        heads, scale, tk, nk_valid, exp_bf16):
    ki = pl.program_id(2)
    nk_steps = pl.num_programs(2)

    # ---- init (once per (batch, q_tile)): project q head-major, reset stats.
    @pl.when(ki == 0)
    def _():
        xq = x_ref[0]                                          # (tq, Dq) bf16
        for h in range(heads):                                 # static unroll
            q_h = jnp.dot(xq, wq_ref[h], preferred_element_type=jnp.float32)
            q_s[h] = (q_h * scale).astype(jnp.bfloat16)        # fold 1/sqrt(dh)
        m_s[...] = jnp.full_like(m_s, -jnp.inf)
        l_s[...] = jnp.zeros_like(l_s)
        acc_s[...] = jnp.zeros_like(acc_s)

    # ---- one kv step: batched-over-heads scores + online softmax + P.V
    q = q_s[...]                                               # (h, tq, dh) bf16
    k = k_ref[0]                                               # (h, tk, dh) bf16
    v = v_ref[0]                                               # (h, tk, dh) bf16

    s = jnp.einsum('hqd,hkd->hqk', q, k,
                   preferred_element_type=jnp.float32)         # (h, tq, tk) f32

    if nk_valid is not None:       # static: mask zero-padded key columns
        col = ki * tk + jax.lax.broadcasted_iota(jnp.int32, (1, 1, tk), 2)
        s = jnp.where(col < nk_valid, s, -jnp.inf)

    m_prev = m_s[...]
    m_new = jnp.maximum(m_prev, s.max(axis=-1, keepdims=True))
    alpha = jnp.exp(m_prev - m_new)
    if exp_bf16:   # bf16 EUP exp (v6e/v7x); keep f32 on v5e (exp_bf16=False)
        p = jnp.exp((s - m_new).astype(jnp.bfloat16))
    else:
        p = jnp.exp(s - m_new)
    l_s[...] = alpha * l_s[...] + jnp.sum(p.astype(jnp.float32),
                                          axis=-1, keepdims=True)
    pv = jnp.einsum('hqk,hkd->hqd', p.astype(jnp.bfloat16), v,
                    preferred_element_type=jnp.float32)        # (h, tq, dh)
    acc_s[...] = alpha * acc_s[...] + pv
    m_s[...] = m_new

    # ---- finalize: normalize, fuse heads, single deep output matmul (+bias).
    @pl.when(ki == nk_steps - 1)
    def _():
        inv_l = pl.reciprocal(l_s[...], approx=True)           # (h, tq, 1)
        o_flat = jnp.concatenate(
            [(acc_s[h] * inv_l[h]).astype(jnp.bfloat16) for h in range(heads)],
            axis=-1)                                           # (tq, inner)
        out = jnp.dot(o_flat, wo_ref[...],
                      preferred_element_type=jnp.float32) + bo_ref[...]
        o_ref[0] = out.astype(o_ref.dtype)


def _round_up(n, m):
    return -(-n // m) * m


def mem_efficient_cross_attention_pallas(x, context, params, *, heads, dim_head,
                                         tq=None, tk=None, exp_bf16=True):
    """Forward pass of MemoryEfficientCrossAttention (inference).

    x:       (B, Nq, query_dim)
    context: (B, Nk, context_dim) or None (self-attention -> context := x)
    params (torch layouts): wq/wk/wv (inner, in_dim) bias-free;
                            wo (query_dim, inner); bo (query_dim,)
    Set exp_bf16=False on TPU v5e (no bf16 EUP/VPU).
    """
    if context is None:
        context = x
    out_dtype = x.dtype
    B, Nq, Dq = x.shape
    Bc, Nk, Dc = context.shape
    assert Bc == B
    inner = heads * dim_head
    assert params["wq"].shape == (inner, Dq)
    assert params["wk"].shape == (inner, Dc)
    assert params["wv"].shape == (inner, Dc)
    assert params["wo"].shape == (Dq, inner)

    # --- tile selection: lane/MXU-dense; keep >=2 parallel (b, q-tile) units
    #     so both TensorCores on v7x get work.
    if tq is None:
        tq = 256 if Nq >= 256 else 128
        if B * (_round_up(Nq, tq) // tq) < 2 and tq > 128:
            tq = 128
    if tk is None:
        tk = 256 if Nk > 128 else 128
    nq_pad = _round_up(Nq, tq)
    nk_pad = _round_up(Nk, tk)

    # --- activations cross the boundary as bf16 (halves input DMA bytes).
    x_b = x.astype(jnp.bfloat16)
    ctx_b = context.astype(jnp.bfloat16)
    if nq_pad != Nq:
        x_b = jnp.pad(x_b, ((0, 0), (0, nq_pad - Nq), (0, 0)))
    if nk_pad != Nk:
        ctx_b = jnp.pad(ctx_b, ((0, 0), (0, nk_pad - Nk), (0, 0)))

    # --- weights: head-major (heads, in_dim, dim_head) bf16 for q/k/v;
    #     (inner, Dq) bf16 for the fused output projection.
    wq_r = params["wq"].reshape(heads, dim_head, Dq).transpose(0, 2, 1).astype(jnp.bfloat16)
    wk_r = params["wk"].reshape(heads, dim_head, Dc).transpose(0, 2, 1).astype(jnp.bfloat16)
    wv_r = params["wv"].reshape(heads, dim_head, Dc).transpose(0, 2, 1).astype(jnp.bfloat16)
    woT = params["wo"].T.astype(jnp.bfloat16)                  # (inner, Dq)
    bo = params["bo"].reshape(1, Dq).astype(jnp.float32)

    # ------------------------------------------------------------------
    # Stage 1: project K/V once (not once per q-tile) -> bf16 head-major.
    # ------------------------------------------------------------------
    k_hm, v_hm = pl.pallas_call(
        functools.partial(_kv_proj_kernel, heads=heads),
        out_shape=(
            jax.ShapeDtypeStruct((B, heads, nk_pad, dim_head), jnp.bfloat16),
            jax.ShapeDtypeStruct((B, heads, nk_pad, dim_head), jnp.bfloat16),
        ),
        grid_spec=pltpu.PrefetchScalarGridSpec(
            num_scalar_prefetch=0,
            grid=(B, nk_pad // tk),
            in_specs=[
                pl.BlockSpec((1, tk, Dc), lambda b, n: (b, n, 0)),
                pl.BlockSpec((heads, Dc, dim_head), lambda b, n: (0, 0, 0)),
                pl.BlockSpec((heads, Dc, dim_head), lambda b, n: (0, 0, 0)),
            ],
            out_specs=[
                pl.BlockSpec((1, heads, tk, dim_head), lambda b, n: (b, 0, n, 0)),
                pl.BlockSpec((1, heads, tk, dim_head), lambda b, n: (b, 0, n, 0)),
            ],
        ),
        compiler_params=pltpu.CompilerParams(
            dimension_semantics=("parallel", "parallel"),
            vmem_limit_bytes=32 * 1024 * 1024,
        ),
    )(ctx_b, wk_r, wv_r)

    # ------------------------------------------------------------------
    # Stage 2: fused q-projection + flash attention + output projection.
    # ------------------------------------------------------------------
    scale = float(dim_head) ** -0.5
    kernel = functools.partial(
        _flash_xattn_kernel, heads=heads, scale=scale, tk=tk,
        nk_valid=(Nk if nk_pad != Nk else None), exp_bf16=exp_bf16)

    grid = (B, nq_pad // tq, nk_pad // tk)
    out = pl.pallas_call(
        kernel,
        out_shape=jax.ShapeDtypeStruct((B, nq_pad, Dq), out_dtype),
        grid_spec=pltpu.PrefetchScalarGridSpec(
            num_scalar_prefetch=0,
            grid=grid,
            in_specs=[
                pl.BlockSpec((1, tq, Dq), lambda b, qi, ki: (b, qi, 0)),                  # x (q tile)
                pl.BlockSpec((1, heads, tk, dim_head), lambda b, qi, ki: (b, 0, ki, 0)),  # K tile
                pl.BlockSpec((1, heads, tk, dim_head), lambda b, qi, ki: (b, 0, ki, 0)),  # V tile
                pl.BlockSpec((heads, Dq, dim_head), lambda b, qi, ki: (0, 0, 0)),         # Wq (head-major)
                pl.BlockSpec((inner, Dq), lambda b, qi, ki: (0, 0)),                      # Wo^T
                pl.BlockSpec((1, Dq), lambda b, qi, ki: (0, 0)),                          # bo
            ],
            out_specs=pl.BlockSpec((1, tq, Dq), lambda b, qi, ki: (b, qi, 0)),
            scratch_shapes=[
                pltpu.VMEM((heads, tq, dim_head), jnp.bfloat16),   # scaled q (head-major)
                pltpu.VMEM((heads, tq, 1), jnp.float32),           # running max m
                pltpu.VMEM((heads, tq, 1), jnp.float32),           # running sum l
                pltpu.VMEM((heads, tq, dim_head), jnp.float32),    # accumulator
            ],
        ),
        compiler_params=pltpu.CompilerParams(
            dimension_semantics=("parallel", "parallel", "arbitrary"),
            # Fits the v7x 64 MiB/TC budget; constant-index weight blocks are
            # fetched once and only K/V tiles are re-DMA'd in steady state.
            vmem_limit_bytes=32 * 1024 * 1024,
        ),
    )(x_b, k_hm, v_hm, wq_r, woT, bo)

    return out[:, :Nq, :]


def mem_efficient_cross_attention_reference(x, context, params, *, heads, dim_head):
    """Pure-JAX f32 reference matching the PyTorch forward."""
    if context is None:
        context = x
    B, Nq, Dq = x.shape
    inner = heads * dim_head
    q = jnp.einsum("bnd,id->bni", x, params["wq"])
    k = jnp.einsum("bnd,id->bni", context, params["wk"])
    v = jnp.einsum("bnd,id->bni", context, params["wv"])

    def split(t):
        return t.reshape(t.shape[0], t.shape[1], heads, dim_head).transpose(0, 2, 1, 3)

    qh, kh, vh = split(q), split(k), split(v)
    s = jnp.einsum("bhqd,bhkd->bhqk", qh, kh) * (float(dim_head) ** -0.5)
    p = jax.nn.softmax(s, axis=-1)
    o = jnp.einsum("bhqk,bhkd->bhqd", p, vh)
    o = o.transpose(0, 2, 1, 3).reshape(B, Nq, inner)
    return jnp.einsum("bni,oi->bno", o, params["wo"]) + params["bo"].reshape(1, 1, Dq)


if __name__ == "__main__":
    # Small but TPU-representative shapes. Nk=200 is deliberately NOT a
    # multiple of the kv tile so the pad-and-mask path is exercised too.
    B, Nq, Nk = 2, 256, 200
    query_dim, context_dim = 128, 128
    heads, dim_head = 2, 64
    inner = heads * dim_head

    key = jax.random.PRNGKey(0)
    ks = jax.random.split(key, 8)
    x = jax.random.normal(ks[0], (B, Nq, query_dim), dtype=jnp.float32)
    context = jax.random.normal(ks[1], (B, Nk, context_dim), dtype=jnp.float32)

    params = {
        "wq": 0.05 * jax.random.normal(ks[2], (inner, query_dim), dtype=jnp.float32),
        "wk": 0.05 * jax.random.normal(ks[3], (inner, context_dim), dtype=jnp.float32),
        "wv": 0.05 * jax.random.normal(ks[4], (inner, context_dim), dtype=jnp.float32),
        "wo": 0.05 * jax.random.normal(ks[5], (query_dim, inner), dtype=jnp.float32),
        "bo": 0.05 * jax.random.normal(ks[6], (query_dim,), dtype=jnp.float32),
    }

    # tq=tk=128 -> 2 q-tiles and 2 kv-steps per batch element, exercising the
    # online-softmax accumulation, the key-padding mask, and the pipeline.
    out = mem_efficient_cross_attention_pallas(
        x, context, params, heads=heads, dim_head=dim_head, tq=128, tk=128)
    out = jax.block_until_ready(out)

    ref = mem_efficient_cross_attention_reference(
        x, context, params, heads=heads, dim_head=dim_head)
    ref = jax.block_until_ready(ref)

    assert out.shape == (B, Nq, query_dim)
    max_err = float(jnp.max(jnp.abs(out - ref)))
    # bf16 MXU operands / bf16 exp with f32 accumulation vs an f32 reference.
    assert jnp.allclose(out, ref, atol=3e-2, rtol=3e-2), f"max abs diff {max_err}"

    print("KERNEL_OK")
</pallas_src>

<mosaic_0001>
module attributes {stable_mosaic.version = 11 : i64} {
  func.func @_kv_proj_kernel(%arg0: i32, %arg1: i32, %arg2: memref<1x128x128xbf16, #tpu.memory_space<vmem>>, %arg3: memref<2x128x64xbf16, #tpu.memory_space<vmem>>, %arg4: memref<2x128x64xbf16, #tpu.memory_space<vmem>>, %arg5: memref<1x2x128x64xbf16, #tpu.memory_space<vmem>>, %arg6: memref<1x2x128x64xbf16, #tpu.memory_space<vmem>>) attributes {dimension_semantics = [#tpu.dimension_semantics<parallel>, #tpu.dimension_semantics<parallel>], iteration_bounds = array<i64: 2, 2>, scalar_prefetch = 0 : i64, scratch_operands = 0 : i64, tpu.core_type = #tpu.core_type<tc>, window_params = [{transform_indices = @transform_0, window_bounds = array<i64: 1, 128, 128>}, {pipeline_mode = #tpu.pipeline_mode<synchronous>, transform_indices = @transform_1, window_bounds = array<i64: 2, 128, 64>}, {pipeline_mode = #tpu.pipeline_mode<synchronous>, transform_indices = @transform_2, window_bounds = array<i64: 2, 128, 64>}, {transform_indices = @transform_3, window_bounds = array<i64: 1, 2, 128, 64>}, {transform_indices = @transform_4, window_bounds = array<i64: 1, 2, 128, 64>}]} {
    %c0 = arith.constant 0 : index
    %c0_0 = arith.constant 0 : index
    %c0_1 = arith.constant 0 : index
    %0 = vector.load %arg2[%c0, %c0_0, %c0_1] : memref<1x128x128xbf16, #tpu.memory_space<vmem>>, vector<1x128x128xbf16>
    %1 = vector.shape_cast %0 : vector<1x128x128xbf16> to vector<128x128xbf16>
    %c0_2 = arith.constant 0 : index
    %c0_3 = arith.constant 0 : index
    %c0_4 = arith.constant 0 : index
    %2 = vector.load %arg3[%c0_2, %c0_3, %c0_4] : memref<2x128x64xbf16, #tpu.memory_space<vmem>>, vector<1x128x64xbf16>
    %3 = vector.shape_cast %2 : vector<1x128x64xbf16> to vector<128x64xbf16>
    %cst = arith.constant dense<0.000000e+00> : vector<128x64xf32>
    %4 = tpu.matmul %1, %3, %cst {dimension_numbers = #tpu.dot_dimension_numbers<[1], [0], [0], [1], [0, 0, 1, 1], [], []>} : vector<128x128xbf16>, vector<128x64xbf16>, vector<128x64xf32> -> vector<128x64xf32>
    %5 = arith.truncf %4 : vector<128x64xf32> to vector<128x64xbf16>
    %c0_5 = arith.constant 0 : index
    %c0_6 = arith.constant 0 : index
    %c0_7 = arith.constant 0 : index
    %c0_8 = arith.constant 0 : index
    %6 = vector.load %arg5[%c0_5, %c0_6, %c0_7, %c0_8] : memref<1x2x128x64xbf16, #tpu.memory_space<vmem>>, vector<1x1x128x64xbf16>
    %7 = vector.shape_cast %6 : vector<1x1x128x64xbf16> to vector<128x64xbf16>
    %8 = vector.shape_cast %5 : vector<128x64xbf16> to vector<1x1x128x64xbf16>
    tpu.vector_store %arg5[%c0_5, %c0_6, %c0_7, %c0_8], %8 {strides = array<i32>} : memref<1x2x128x64xbf16, #tpu.memory_space<vmem>>, vector<1x1x128x64xbf16>,
    %c0_9 = arith.constant 0 : index
    %c0_10 = arith.constant 0 : index
    %c0_11 = arith.constant 0 : index
    %9 = vector.load %arg4[%c0_9, %c0_10, %c0_11] : memref<2x128x64xbf16, #tpu.memory_space<vmem>>, vector<1x128x64xbf16>
    %10 = vector.shape_cast %9 : vector<1x128x64xbf16> to vector<128x64xbf16>
    %cst_12 = arith.constant dense<0.000000e+00> : vector<128x64xf32>
    %11 = tpu.matmul %1, %10, %cst_12 {dimension_numbers = #tpu.dot_dimension_numbers<[1], [0], [0], [1], [0, 0, 1, 1], [], []>} : vector<128x128xbf16>, vector<128x64xbf16>, vector<128x64xf32> -> vector<128x64xf32>
    %12 = arith.truncf %11 : vector<128x64xf32> to vector<128x64xbf16>
    %c0_13 = arith.constant 0 : index
    %c0_14 = arith.constant 0 : index
    %c0_15 = arith.constant 0 : index
    %c0_16 = arith.constant 0 : index
    %13 = vector.load %arg6[%c0_13, %c0_14, %c0_15, %c0_16] : memref<1x2x128x64xbf16, #tpu.memory_space<vmem>>, vector<1x1x128x64xbf16>
    %14 = vector.shape_cast %13 : vector<1x1x128x64xbf16> to vector<128x64xbf16>
    %15 = vector.shape_cast %12 : vector<128x64xbf16> to vector<1x1x128x64xbf16>
    tpu.vector_store %arg6[%c0_13, %c0_14, %c0_15, %c0_16], %15 {strides = array<i32>} : memref<1x2x128x64xbf16, #tpu.memory_space<vmem>>, vector<1x1x128x64xbf16>,
    %c1 = arith.constant 1 : index
    %c0_17 = arith.constant 0 : index
    %c0_18 = arith.constant 0 : index
    %16 = vector.load %arg3[%c1, %c0_17, %c0_18] : memref<2x128x64xbf16, #tpu.memory_space<vmem>>, vector<1x128x64xbf16>
    %17 = vector.shape_cast %16 : vector<1x128x64xbf16> to vector<128x64xbf16>
    %cst_19 = arith.constant dense<0.000000e+00> : vector<128x64xf32>
    %18 = tpu.matmul %1, %17, %cst_19 {dimension_numbers = #tpu.dot_dimension_numbers<[1], [0], [0], [1], [0, 0, 1, 1], [], []>} : vector<128x128xbf16>, vector<128x64xbf16>, vector<128x64xf32> -> vector<128x64xf32>
    %19 = arith.truncf %18 : vector<128x64xf32> to vector<128x64xbf16>
    %c0_20 = arith.constant 0 : index
    %c1_21 = arith.constant 1 : index
    %c0_22 = arith.constant 0 : index
    %c0_23 = arith.constant 0 : index
    %20 = vector.load %arg5[%c0_20, %c1_21, %c0_22, %c0_23] : memref<1x2x128x64xbf16, #tpu.memory_space<vmem>>, vector<1x1x128x64xbf16>
    %21 = vector.shape_cast %20 : vector<1x1x128x64xbf16> to vector<128x64xbf16>
    %22 = vector.shape_cast %19 : vector<128x64xbf16> to vector<1x1x128x64xbf16>
    tpu.vector_store %arg5[%c0_20, %c1_21, %c0_22, %c0_23], %22 {strides = array<i32>} : memref<1x2x128x64xbf16, #tpu.memory_space<vmem>>, vector<1x1x128x64xbf16>,
    %c1_24 = arith.constant 1 : index
    %c0_25 = arith.constant 0 : index
    %c0_26 = arith.constant 0 : index
    %23 = vector.load %arg4[%c1_24, %c0_25, %c0_26] : memref<2x128x64xbf16, #tpu.memory_space<vmem>>, vector<1x128x64xbf16>
    %24 = vector.shape_cast %23 : vector<1x128x64xbf16> to vector<128x64xbf16>
    %cst_27 = arith.constant dense<0.000000e+00> : vector<128x64xf32>
    %25 = tpu.matmul %1, %24, %cst_27 {dimension_numbers = #tpu.dot_dimension_numbers<[1], [0], [0], [1], [0, 0, 1, 1], [], []>} : vector<128x128xbf16>, vector<128x64xbf16>, vector<128x64xf32> -> vector<128x64xf32>
    %26 = arith.truncf %25 : vector<128x64xf32> to vector<128x64xbf16>
    %c0_28 = arith.constant 0 : index
    %c1_29 = arith.constant 1 : index
    %c0_30 = arith.constant 0 : index
    %c0_31 = arith.constant 0 : index
    %27 = vector.load %arg6[%c0_28, %c1_29, %c0_30, %c0_31] : memref<1x2x128x64xbf16, #tpu.memory_space<vmem>>, vector<1x1x128x64xbf16>
    %28 = vector.shape_cast %27 : vector<1x1x128x64xbf16> to vector<128x64xbf16>
    %29 = vector.shape_cast %26 : vector<128x64xbf16> to vector<1x1x128x64xbf16>
    tpu.vector_store %arg6[%c0_28, %c1_29, %c0_30, %c0_31], %29 {strides = array<i32>} : memref<1x2x128x64xbf16, #tpu.memory_space<vmem>>, vector<1x1x128x64xbf16>,
    return
  }
  func.func @transform_0(%arg0: i32, %arg1: i32) -> (i32, i32, i32) {
    %c0_i32 = arith.constant 0 : i32
    %c0_i32_0 = arith.constant 0 : i32
    return %arg0, %arg1, %c0_i32 : i32, i32, i32
  }
  func.func @transform_1(%arg0: i32, %arg1: i32) -> (i32, i32, i32) {
    %c0_i32 = arith.constant 0 : i32
    %c0_i32_0 = arith.constant 0 : i32
    %c0_i32_1 = arith.constant 0 : i32
    %c0_i32_2 = arith.constant 0 : i32
    return %c0_i32, %c0_i32_0, %c0_i32_1 : i32, i32, i32
  }
  func.func @transform_2(%arg0: i32, %arg1: i32) -> (i32, i32, i32) {
    %c0_i32 = arith.constant 0 : i32
    %c0_i32_0 = arith.constant 0 : i32
    %c0_i32_1 = arith.constant 0 : i32
    %c0_i32_2 = arith.constant 0 : i32
    return %c0_i32, %c0_i32_0, %c0_i32_1 : i32, i32, i32
  }
  func.func @transform_3(%arg0: i32, %arg1: i32) -> (i32, i32, i32, i32) {
    %c0_i32 = arith.constant 0 : i32
    %c0_i32_0 = arith.constant 0 : i32
    %c0_i32_1 = arith.constant 0 : i32
    return %arg0, %c0_i32, %arg1, %c0_i32_0 : i32, i32, i32, i32
  }
  func.func @transform_4(%arg0: i32, %arg1: i32) -> (i32, i32, i32, i32) {
    %c0_i32 = arith.constant 0 : i32
    %c0_i32_0 = arith.constant 0 : i32
    %c0_i32_1 = arith.constant 0 : i32
    return %arg0, %c0_i32, %arg1, %c0_i32_0 : i32, i32, i32, i32
  }
}

</mosaic_0001>

<bundles_post_ra>
// kernel: tpu_custom_call.1
= control target key start
LH: loop header
LB: loop body
LE: loop exit
PB: predicated region body
PF: predicated region fallthrough
CT: control target
= control target key end

     0   :  { %s1759_s15 = smov 0   ;;  %s1761_s16 = smov 0   ;;  %s2134_s0 = inlined_call_operand.vmem [shape: bf16[2,256,128], index: 0, kind: input, shape index: {}]   ;;  %s2135_s1 = inlined_call_operand.vmem [shape: bf16[2,128,64], index: 1, kind: input, shape index: {}]   ;;  %s2136_s2 = inlined_call_operand.vmem [shape: bf16[2,128,64], index: 2, kind: input, shape index: {}]   ;;  %s2137_s3 = inlined_call_operand.vmem [shape: bf16[2,2,256,64], index: 3, kind: output, shape index: {0}]   ;;  %s2138_s4 = inlined_call_operand.vmem [shape: bf16[2,2,256,64], index: 4, kind: output, shape index: {1}]  }
   0x1   :  { %s1763_s17 = smov 0   ;;  %s1765_s18 = smov 0  }
   0x2   :  { %s1767_s19 = smov 0   ;;  %s1769_s20 = smov 0  }
   0x3   :  { %s1771_s21 = smov 0  }
   0x4 LB: > { %s24_s22 = sadd.s32 1, %s1724_s19  ;;  %s27_s23 = sadd.s32 1, %s1728_s20  ;;  %s1732_s21 = sphi %s1771_s21, %s15_s21   ;;  %s1728_s20 = sphi %s1769_s20, %s2145_s20   ;;  %s1724_s19 = sphi %s1767_s19, %s2144_s19   ;;  %s1720_s18 = sphi %s1765_s18, %s2143_s18   ;;  %s1716_s17 = sphi %s1763_s17, %s2142_s17   ;;  %s1712_s16 = sphi %s1761_s16, %s2141_s16   ;;  %s1708_s15 = sphi %s1759_s15, %s2140_s15  }
   0x5   : > { %p25_p0 = scmp.ge.s32.totalorder %s24_s22, 2  ;;  %s1338_s24 = sadd.s32 4294967295, %s1732_s21  }
   0x6   : > { %p116_p1 = scmp.ne.s32.totalorder %s1712_s16, %s1708_s15  ;;  %p117_p2 = scmp.eq.s32.totalorder %s1338_s24, 3 }
   0x7   : > { %s2147_s22 = smov (%p25_p0, %s24_s22), 0  ;;  %s2149_s23 = smov (!%p25_p0, %s27_s23), %s1728_s20 }
   0x8   : > { %s102_s25 = ssub.s32 %s1724_s19, %s2147_s22  ;;  %p29_p3 = scmp.ge.s32.totalorder %s2149_s23, 2 }
   0x9   : > { %p1342_p4 = scmp.ge.s32.totalorder %s1732_s21, 1  ;;  %p1805_p5 = por %p117_p2, %p116_p1 }
   0xa   : > { %p188_p6 = scmp.lt.s32.totalorder %s1732_s21, 5  ;;  %s2151_s23 = smov (%p29_p3, %s2149_s23), 0 }
   0xb   : > { %s101_s27 = ssub.s32 %s1728_s20, %s2151_s23  ;;  %s106_s29 = sadd.s32 1, %s1712_s16 }
   0xc   : > { %p189_p7 = pnand %p1342_p4, %p188_p6  ;;  %s103_s28 = sor.u32 %s102_s25, %s101_s27 }
   0xd   : > { %p104_p8 = scmp.eq.s32.totalorder %s103_s28, 0  ;;  %s1855_s14 = sshll.u32 (!%p189_p7), %s1716_s17, 4 }
   0xe   : > { %192 = sbr.rel (%p189_p7) target bundleno = 336 (0x150), region = 32  ;;  %p222_p9 = scmp.lt.s32.totalorder (!%p189_p7), %s1720_s18, 1 }
   0xf   : > { %s1816_s30 = scalar_select %p104_p8, %s1712_s16, %s106_s29  }
  0x10   : > { %p224_p10 = scmp.lt.s32.totalorder (!%p189_p7), %s1855_s14, 31  ;;  %s212_s5 = sand.u32 (!%p189_p7), 1, %s1708_s15  }
  0x11   : > { %s1343_s17 = sshll.u32 (!%p189_p7), %s212_s5, 7 }
  0x12   : > { %s1935_s6 = scalar_lea.vmem (!%p189_p7), [#allocation2], %s1343_s17 }
  0x13   : > { %v1597_v0 = vld [vmem:[%s2135_s1 + $0x38] sm:$0xff]  ;;  %v1596_v4 = vld [vmem:[%s2135_s1 + $0x30] sm:$0xff]  ;;  %v1595_v8 = vld [vmem:[%s2135_s1 + $0x28] sm:$0xff]  ;;  %s223_s7 = scalar_select %p222_p9, %s1720_s18, 1  ;;  %vm426_vm0 = vcmask 519168  }
  0x14   : > { %v1605_v1 = vld [vmem:[%s2136_s2 + $0x38] sm:$0xff]  ;;  %361 = vmatpush.bf16.msra.mxu0 %v1597_v0  ;;  %v1604_v5 = vld [vmem:[%s2136_s2 + $0x30] sm:$0xff]  ;;  %v1603_v9 = vld [vmem:[%s2136_s2 + $0x28] sm:$0xff]  ;;  %s225_s27 = scalar_select %p224_p10, %s1855_s14, 31 }
  0x15   : > { %v1613_v2 = vld [vmem:[%s2135_s1 + $0x78] sm:$0xff]  ;;  %507 = vmatpush.bf16.msra.mxu1 %v1605_v1  ;;  %v1612_v6 = vld [vmem:[%s2135_s1 + $0x70] sm:$0xff]  ;;  %v1611_v10 = vld [vmem:[%s2135_s1 + $0x68] sm:$0xff]  ;;  %s1346_s28 = sshll.u32 %s223_s7, 5  ;;  %s1575_s15 = sshll.u32 (%p1805_p5), %s1720_s18, 6 }
  0x16   : > { %v1621_v3 = vld [vmem:[%s2136_s2 + $0x78] sm:$0xff]  ;;  %653 = vmatpush.bf16.msra.mxu2 %v1613_v2  ;;  %v1620_v7 = vld [vmem:[%s2136_s2 + $0x70] sm:$0xff]  ;;  %v1619_v11 = vld [vmem:[%s2136_s2 + $0x68] sm:$0xff]  ;;  %s227_s7 = sadd.s32 %s1346_s28, %s225_s27  ;;  %s895_s28 = sadd.s32 (%p1805_p5), %s1575_s15, %s1855_s14 }
  0x17   : > { %800 = vmatpush.bf16.msra.mxu3 %v1621_v3  ;;  %v1594_v12 = vld [vmem:[%s2135_s1 + $0x20] sm:$0xff]  ;;  %v1593_v16 = vld [vmem:[%s2135_s1 + $0x18] sm:$0xff]  ;;  %v1592_v20 = vld [vmem:[%s2135_s1 + $0x10] sm:$0xff]  ;;  %s1347_s27 = sshll.u32 %s227_s7, 2  ;;  %s1576_s8 = sshll.u32 (%p1805_p5), %s895_s28, 2 }
  0x18   : > { %362 = vmatpush.bf16.msra.mxu0 %v1596_v4  ;;  %v1602_v13 = vld [vmem:[%s2136_s2 + $0x20] sm:$0xff]  ;;  %v1601_v17 = vld [vmem:[%s2136_s2 + $0x18] sm:$0xff]  ;;  %v1600_v21 = vld [vmem:[%s2136_s2 + $0x10] sm:$0xff]  ;;  %s1918_s13 = scalar_lea.vmem %s2134_s0, %s1347_s27  ;;  %s1939_s27 = scalar_lea.vmem [#allocation3], %s1343_s17 }
  0x19   : > { %508 = vmatpush.bf16.msra.mxu1 %v1604_v5  ;;  %v1610_v14 = vld [vmem:[%s2135_s1 + $0x60] sm:$0xff]  ;;  %v1609_v18 = vld [vmem:[%s2135_s1 + $0x58] sm:$0xff]  ;;  %v1608_v22 = vld [vmem:[%s2135_s1 + $0x50] sm:$0xff]  ;;  %s897_s11 = scalar_lea.vmem (%p1805_p5), %s2137_s3, %s1576_s8 }
  0x1a   : > { %654 = vmatpush.bf16.msra.mxu2 %v1612_v6  ;;  %v1618_v15 = vld [vmem:[%s2136_s2 + $0x60] sm:$0xff]  ;;  %v1617_v19 = vld [vmem:[%s2136_s2 + $0x58] sm:$0xff]  ;;  %v1616_v23 = vld [vmem:[%s2136_s2 + $0x50] sm:$0xff] }
  0x1b   : > { %801 = vmatpush.bf16.msra.mxu3 %v1620_v7  ;;  %v1591_v24 = vld [vmem:[%s2135_s1 + $0x8] sm:$0xff]  ;;  %v1590_v28 = vld [vmem:[%s2135_s1] sm:$0xff]  ;;  %v1584_v34 = vld [vmem:[%s1918_s13 + $0x10] sm:$0xff] }
  0x1c   : > { %363 = vmatpush.bf16.msra.mxu0 %v1595_v8  ;;  %v1599_v25 = vld [vmem:[%s2136_s2 + $0x8] sm:$0xff]  ;;  %v1598_v29 = vld [vmem:[%s2136_s2] sm:$0xff]  ;;  %v1585_v35 = vld [vmem:[%s1918_s13 + $0x18] sm:$0xff] }
  0x1d   : > { %509 = vmatpush.bf16.msra.mxu1 %v1603_v9  ;;  %v1607_v26 = vld [vmem:[%s2135_s1 + $0x48] sm:$0xff]  ;;  %v1606_v30 = vld [vmem:[%s2135_s1 + $0x40] sm:$0xff]  ;;  %v1588_v38 = vld [vmem:[%s1918_s13 + $0x30] sm:$0xff] }
  0x1e   : > { %655 = vmatpush.bf16.msra.mxu2 %v1611_v10  ;;  %v1615_v27 = vld [vmem:[%s2136_s2 + $0x48] sm:$0xff]  ;;  %v1614_v31 = vld [vmem:[%s2136_s2 + $0x40] sm:$0xff]  ;;  %v1589_v39 = vld [vmem:[%s1918_s13 + $0x38] sm:$0xff] }
  0x1f   : > { %802 = vmatpush.bf16.msra.mxu3 %v1619_v11  ;;  %v1582_v32 = vld [vmem:[%s1918_s13] sm:$0xff]  ;;  %v1583_v33 = vld [vmem:[%s1918_s13 + $0x8] sm:$0xff] }
  0x20   : > { %364 = vmatpush.bf16.msra.mxu0 %v1594_v12  ;;  %v1586_v36 = vld [vmem:[%s1918_s13 + $0x20] sm:$0xff]  ;;  %v1587_v37 = vld [vmem:[%s1918_s13 + $0x28] sm:$0xff] }
  0x21   : > { %510 = vmatpush.bf16.msra.mxu1 %v1602_v13 }
  0x22   : > { %656 = vmatpush.bf16.msra.mxu2 %v1610_v14 }
  0x23   : > { %803 = vmatpush.bf16.msra.mxu3 %v1618_v15 }
  0x24   : > { %365 = vmatpush.bf16.msra.mxu0 %v1593_v16 }
  0x25   : > { %511 = vmatpush.bf16.msra.mxu1 %v1601_v17 }
  0x26   : > { %657 = vmatpush.bf16.msra.mxu2 %v1609_v18 }
  0x27   : > { %804 = vmatpush.bf16.msra.mxu3 %v1617_v19 }
  0x28   : > { %366 = vmatpush.bf16.msra.mxu0 %v1592_v20 }
  0x29   : > { %512 = vmatpush.bf16.msra.mxu1 %v1600_v21 }
  0x2a   : > { %658 = vmatpush.bf16.msra.mxu2 %v1608_v22 }
  0x2b   : > { %805 = vmatpush.bf16.msra.mxu3 %v1616_v23 }
  0x2c   : > { %367 = vmatpush.bf16.msra.mxu0 %v1591_v24 }
  0x2d   : > { %513 = vmatpush.bf16.msra.mxu1 %v1599_v25 }
  0x2e   : > { %659 = vmatpush.bf16.msra.mxu2 %v1607_v26 }
  0x2f   : > { %806 = vmatpush.bf16.msra.mxu3 %v1615_v27 }
  0x30   : > { %368 = vmatpush.bf16.msra.mxu0 %v1590_v28 }
  0x31   : > { %514 = vmatpush.bf16.msra.mxu1 %v1598_v29 }
  0x32   : > { %660 = vmatpush.bf16.msra.mxu2 %v1606_v30 }
  0x33   : > { %807 = vmatpush.bf16.msra.mxu3 %v1614_v31  ;;  %369 = vmatmul.bf16.vlgmr.msra.gmra.mxu0 %v1582_v32 }
  0x34   : > { %515 = vmatmul.bf16.vlgmr.msra.gmra.mxu1 %v1582_v32 }
  0x35   : > { %661 = vmatmul.bf16.vlgmr.msra.gmra.mxu2 %v1582_v32 }
  0x36   : > { %808 = vmatmul.bf16.vlgmr.msra.gmra.mxu3 %v1582_v32 }
  0x43   : > { %374 = vmatmul.bf16.gmra.mxu0 %v1583_v33 }
  0x44   : > { %520 = vmatmul.bf16.gmra.mxu1 %v1583_v33 }
  0x45   : > { %666 = vmatmul.bf16.gmra.mxu2 %v1583_v33 }
  0x46   : > { %813 = vmatmul.bf16.gmra.mxu3 %v1583_v33 }
  0x53   : > { %379 = vmatmul.bf16.gmra.mxu0 %v1584_v34 }
  0x54   : > { %525 = vmatmul.bf16.gmra.mxu1 %v1584_v34 }
  0x55   : > { %671 = vmatmul.bf16.gmra.mxu2 %v1584_v34 }
  0x56   : > { %818 = vmatmul.bf16.gmra.mxu3 %v1584_v34 }
  0x63   : > { %384 = vmatmul.bf16.gmra.mxu0 %v1585_v35 }
  0x64   : > { %530 = vmatmul.bf16.gmra.mxu1 %v1585_v35 }
  0x65   : > { %676 = vmatmul.bf16.gmra.mxu2 %v1585_v35 }
  0x66   : > { %823 = vmatmul.bf16.gmra.mxu3 %v1585_v35 }
  0x73   : > { %389 = vmatmul.bf16.gmra.mxu0 %v1586_v36 }
  0x74   : > { %535 = vmatmul.bf16.gmra.mxu1 %v1586_v36 }
  0x75   : > { %681 = vmatmul.bf16.gmra.mxu2 %v1586_v36 }
  0x76   : > { %828 = vmatmul.bf16.gmra.mxu3 %v1586_v36 }
  0x83   : > { %394 = vmatmul.bf16.gmra.mxu0 %v1587_v37 }
  0x84   : > { %540 = vmatmul.bf16.gmra.mxu1 %v1587_v37 }
  0x85   : > { %686 = vmatmul.bf16.gmra.mxu2 %v1587_v37 }
  0x86   : > { %833 = vmatmul.bf16.gmra.mxu3 %v1587_v37 }
  0x93   : > { %399 = vmatmul.bf16.gmra.mxu0 %v1588_v38 }
  0x94   : > { %545 = vmatmul.bf16.gmra.mxu1 %v1588_v38 }
  0x95   : > { %691 = vmatmul.bf16.gmra.mxu2 %v1588_v38 }
  0x96   : > { %838 = vmatmul.bf16.gmra.mxu3 %v1588_v38 }
  0xa3   : > { %404 = vmatmul.bf16.gmra.mxu0 %v1589_v39 }
  0xa4   : > { %550 = vmatmul.bf16.gmra.mxu1 %v1589_v39 }
  0xa5   : > { %696 = vmatmul.bf16.gmra.mxu2 %v1589_v39 }
  0xa6   : > { %843 = vmatmul.bf16.gmra.mxu3 %v1589_v39 }
  0xb0   : > { %v370_v40 = vpop.f32.mrf.mxu0 }
  0xb1   : > { %v516_v41 = vpop.f32.mrf.mxu1  ;;  %v410_v42 = vpack.c.bf16 %v370_v40, %v370_v40 }
  0xb2   : > { %v556_v43 = vpack.c.bf16 %v516_v41, %v516_v41 }
  0xb3   : > { %427 = vst.msk [vmem:[%s1935_s6] sm:$0xf] %vm426_vm0, %v410_v42 }
  0xb4   : > { %572 = vst.msk [vmem:[%s1939_s27] sm:$0xf] %vm426_vm0, %v556_v43 }
  0xb8   : > { %v662_v44 = vpop.f32.mrf.mxu2  ;;  %v372_v48 = vpop.f32.mrf.mxu0 }
  0xb9   : > { %v809_v45 = vpop.f32.mrf.mxu3  ;;  %v702_v46 = vpack.c.bf16 %v662_v44, %v662_v44  ;;  %v518_v49 = vpop.f32.mrf.mxu1  ;;  %v411_v50 = vpack.c.bf16 %v372_v48, %v372_v48 }
  0xba   : > { %v849_v47 = vpack.c.bf16 %v809_v45, %v809_v45  ;;  %v557_v51 = vpack.c.bf16 %v518_v49, %v518_v49 }
  0xbb   : > { %1492 = vst.msk [vmem:[%s1935_s6 + $0x40] sm:$0xf] %vm426_vm0, %v702_v46 }
  0xbc   : > { %1556 = vst.msk [vmem:[%s1939_s27 + $0x40] sm:$0xf] %vm426_vm0, %v849_v47 }
  0xbd   : > { %428 = vst.msk [vmem:[%s1935_s6 + $0x4] sm:$0xf] %vm426_vm0, %v411_v50 }
  0xbe   : > { %573 = vst.msk [vmem:[%s1939_s27 + $0x4] sm:$0xf] %vm426_vm0, %v557_v51 }
  0xc0   : > { %v664_v52 = vpop.f32.mrf.mxu2  ;;  %v375_v56 = vpop.f32.mrf.mxu0 }
  0xc1   : > { %v811_v53 = vpop.f32.mrf.mxu3  ;;  %v703_v54 = vpack.c.bf16 %v664_v52, %v664_v52  ;;  %v521_v57 = vpop.f32.mrf.mxu1  ;;  %v412_v58 = vpack.c.bf16 %v375_v56, %v375_v56 }
  0xc2   : > { %v850_v55 = vpack.c.bf16 %v811_v53, %v811_v53  ;;  %v558_v59 = vpack.c.bf16 %v521_v57, %v521_v57 }
  0xc3   : > { %1493 = vst.msk [vmem:[%s1935_s6 + $0x44] sm:$0xf] %vm426_vm0, %v703_v54 }
  0xc4   : > { %1557 = vst.msk [vmem:[%s1939_s27 + $0x44] sm:$0xf] %vm426_vm0, %v850_v55 }
  0xc5   : > { %429 = vst.msk [vmem:[%s1935_s6 + $0x8] sm:$0xf] %vm426_vm0, %v412_v58 }
  0xc6   : > { %574 = vst.msk [vmem:[%s1939_s27 + $0x8] sm:$0xf] %vm426_vm0, %v558_v59 }
  0xc8   : > { %v667_v60 = vpop.f32.mrf.mxu2  ;;  %v377_v0 = vpop.f32.mrf.mxu0 }
  0xc9   : > { %v814_v61 = vpop.f32.mrf.mxu3  ;;  %v704_v62 = vpack.c.bf16 %v667_v60, %v667_v60  ;;  %v523_v1 = vpop.f32.mrf.mxu1  ;;  %v413_v2 = vpack.c.bf16 %v377_v0, %v377_v0 }
  0xca   : > { %v851_v63 = vpack.c.bf16 %v814_v61, %v814_v61  ;;  %v559_v3 = vpack.c.bf16 %v523_v1, %v523_v1 }
  0xcb   : > { %1494 = vst.msk [vmem:[%s1935_s6 + $0x48] sm:$0xf] %vm426_vm0, %v704_v62 }
  0xcc   : > { %1558 = vst.msk [vmem:[%s1939_s27 + $0x48] sm:$0xf] %vm426_vm0, %v851_v63 }
  0xcd   : > { %430 = vst.msk [vmem:[%s1935_s6 + $0xc] sm:$0xf] %vm426_vm0, %v413_v2 }
  0xce   : > { %575 = vst.msk [vmem:[%s1939_s27 + $0xc] sm:$0xf] %vm426_vm0, %v559_v3 }
  0xd0   : > { %v669_v4 = vpop.f32.mrf.mxu2  ;;  %v380_v8 = vpop.f32.mrf.mxu0 }
  0xd1   : > { %v816_v5 = vpop.f32.mrf.mxu3  ;;  %v705_v6 = vpack.c.bf16 %v669_v4, %v669_v4  ;;  %v526_v9 = vpop.f32.mrf.mxu1  ;;  %v414_v10 = vpack.c.bf16 %v380_v8, %v380_v8 }
  0xd2   : > { %v852_v7 = vpack.c.bf16 %v816_v5, %v816_v5  ;;  %v560_v11 = vpack.c.bf16 %v526_v9, %v526_v9 }
  0xd3   : > { %1495 = vst.msk [vmem:[%s1935_s6 + $0x4c] sm:$0xf] %vm426_vm0, %v705_v6 }
  0xd4   : > { %1559 = vst.msk [vmem:[%s1939_s27 + $0x4c] sm:$0xf] %vm426_vm0, %v852_v7 }
  0xd5   : > { %431 = vst.msk [vmem:[%s1935_s6 + $0x10] sm:$0xf] %vm426_vm0, %v414_v10 }
  0xd6   : > { %576 = vst.msk [vmem:[%s1939_s27 + $0x10] sm:$0xf] %vm426_vm0, %v560_v11 }
  0xd8   : > { %v672_v12 = vpop.f32.mrf.mxu2  ;;  %v382_v16 = vpop.f32.mrf.mxu0 }
  0xd9   : > { %v819_v13 = vpop.f32.mrf.mxu3  ;;  %v706_v14 = vpack.c.bf16 %v672_v12, %v672_v12  ;;  %v528_v17 = vpop.f32.mrf.mxu1  ;;  %v415_v18 = vpack.c.bf16 %v382_v16, %v382_v16 }
  0xda   : > { %v853_v15 = vpack.c.bf16 %v819_v13, %v819_v13  ;;  %v561_v19 = vpack.c.bf16 %v528_v17, %v528_v17 }
  0xdb   : > { %1496 = vst.msk [vmem:[%s1935_s6 + $0x50] sm:$0xf] %vm426_vm0, %v706_v14 }
  0xdc   : > { %1560 = vst.msk [vmem:[%s1939_s27 + $0x50] sm:$0xf] %vm426_vm0, %v853_v15 }
  0xdd   : > { %432 = vst.msk [vmem:[%s1935_s6 + $0x14] sm:$0xf] %vm426_vm0, %v415_v18 }
  0xde   : > { %577 = vst.msk [vmem:[%s1939_s27 + $0x14] sm:$0xf] %vm426_vm0, %v561_v19 }
  0xe0   : > { %v674_v20 = vpop.f32.mrf.mxu2  ;;  %v385_v24 = vpop.f32.mrf.mxu0 }
  0xe1   : > { %v821_v21 = vpop.f32.mrf.mxu3  ;;  %v707_v22 = vpack.c.bf16 %v674_v20, %v674_v20  ;;  %v531_v25 = vpop.f32.mrf.mxu1  ;;  %v416_v26 = vpack.c.bf16 %v385_v24, %v385_v24 }
  0xe2   : > { %v854_v23 = vpack.c.bf16 %v821_v21, %v821_v21  ;;  %v562_v27 = vpack.c.bf16 %v531_v25, %v531_v25 }
  0xe3   : > { %1497 = vst.msk [vmem:[%s1935_s6 + $0x54] sm:$0xf] %vm426_vm0, %v707_v22 }
  0xe4   : > { %1561 = vst.msk [vmem:[%s1939_s27 + $0x54] sm:$0xf] %vm426_vm0, %v854_v23 }
  0xe5   : > { %433 = vst.msk [vmem:[%s1935_s6 + $0x18] sm:$0xf] %vm426_vm0, %v416_v26 }
  0xe6   : > { %578 = vst.msk [vmem:[%s1939_s27 + $0x18] sm:$0xf] %vm426_vm0, %v562_v27 }
  0xe8   : > { %v677_v28 = vpop.f32.mrf.mxu2  ;;  %v387_v32 = vpop.f32.mrf.mxu0 }
  0xe9   : > { %v824_v29 = vpop.f32.mrf.mxu3  ;;  %v708_v30 = vpack.c.bf16 %v677_v28, %v677_v28  ;;  %v533_v33 = vpop.f32.mrf.mxu1  ;;  %v417_v34 = vpack.c.bf16 %v387_v32, %v387_v32 }
  0xea   : > { %v855_v31 = vpack.c.bf16 %v824_v29, %v824_v29  ;;  %v563_v35 = vpack.c.bf16 %v533_v33, %v533_v33 }
  0xeb   : > { %1498 = vst.msk [vmem:[%s1935_s6 + $0x58] sm:$0xf] %vm426_vm0, %v708_v30 }
  0xec   : > { %1562 = vst.msk [vmem:[%s1939_s27 + $0x58] sm:$0xf] %vm426_vm0, %v855_v31 }
  0xed   : > { %434 = vst.msk [vmem:[%s1935_s6 + $0x1c] sm:$0xf] %vm426_vm0, %v417_v34 }
  0xee   : > { %579 = vst.msk [vmem:[%s1939_s27 + $0x1c] sm:$0xf] %vm426_vm0, %v563_v35 }
  0xf0   : > { %v679_v36 = vpop.f32.mrf.mxu2  ;;  %v390_v40 = vpop.f32.mrf.mxu0 }
  0xf1   : > { %v826_v37 = vpop.f32.mrf.mxu3  ;;  %v709_v38 = vpack.c.bf16 %v679_v36, %v679_v36  ;;  %v536_v41 = vpop.f32.mrf.mxu1  ;;  %v418_v42 = vpack.c.bf16 %v390_v40, %v390_v40  ;;  %v914_v40 = vld [vmem:[%s1935_s6] sm:$0xff] (%p1805_p5)  }
  0xf2   : > { %v856_v39 = vpack.c.bf16 %v826_v37, %v826_v37  ;;  %v564_v43 = vpack.c.bf16 %v536_v41, %v536_v41  ;;  %v918_v41 = vld [vmem:[%s1935_s6 + $0x8] sm:$0xff] (%p1805_p5)   ;;  %915 = vst [vmem:[%s897_s11] sm:$0xff] (%p1805_p5), %v914_v40  }
  0xf3   : > { %1499 = vst.msk [vmem:[%s1935_s6 + $0x5c] sm:$0xf] %vm426_vm0, %v709_v38 }
  0xf4   : > { %1563 = vst.msk [vmem:[%s1939_s27 + $0x5c] sm:$0xf] %vm426_vm0, %v856_v39 }
  0xf5   : > { %435 = vst.msk [vmem:[%s1935_s6 + $0x20] sm:$0xf] %vm426_vm0, %v418_v42  ;;  %v922_v42 = vld [vmem:[%s1935_s6 + $0x10] sm:$0xff] (%p1805_p5)  }
  0xf6   : > { %580 = vst.msk [vmem:[%s1939_s27 + $0x20] sm:$0xf] %vm426_vm0, %v564_v43  ;;  %v926_v43 = vld [vmem:[%s1935_s6 + $0x18] sm:$0xff] (%p1805_p5)  }
  0xf7   : > { %919 = vst [vmem:[%s897_s11 + $0x8] sm:$0xff] (%p1805_p5), %v918_v41  }
  0xf8   : > { %v682_v44 = vpop.f32.mrf.mxu2  ;;  %v392_v48 = vpop.f32.mrf.mxu0  ;;  %923 = vst [vmem:[%s897_s11 + $0x10] sm:$0xff] (%p1805_p5), %v922_v42  }
  0xf9   : > { %v829_v45 = vpop.f32.mrf.mxu3  ;;  %v710_v46 = vpack.c.bf16 %v682_v44, %v682_v44  ;;  %v538_v49 = vpop.f32.mrf.mxu1  ;;  %v419_v50 = vpack.c.bf16 %v392_v48, %v392_v48  ;;  %927 = vst [vmem:[%s897_s11 + $0x18] sm:$0xff] (%p1805_p5), %v926_v43   ;;  %v946_v48 = vld [vmem:[%s1935_s6 + $0x40] sm:$0xff] (%p1805_p5)  }
  0xfa   : > { %v857_v47 = vpack.c.bf16 %v829_v45, %v829_v45  ;;  %v565_v51 = vpack.c.bf16 %v538_v49, %v538_v49  ;;  %v950_v49 = vld [vmem:[%s1935_s6 + $0x48] sm:$0xff] (%p1805_p5)   ;;  %947 = vst [vmem:[%s897_s11 + $0x80] sm:$0xff] (%p1805_p5), %v946_v48  }
  0xfb   : > { %1500 = vst.msk [vmem:[%s1935_s6 + $0x60] sm:$0xf] %vm426_vm0, %v710_v46 }
  0xfc   : > { %1564 = vst.msk [vmem:[%s1939_s27 + $0x60] sm:$0xf] %vm426_vm0, %v857_v47 }
  0xfd   : > { %436 = vst.msk [vmem:[%s1935_s6 + $0x24] sm:$0xf] %vm426_vm0, %v419_v50  ;;  %v954_v50 = vld [vmem:[%s1935_s6 + $0x50] sm:$0xff] (%p1805_p5)  }
  0xfe   : > { %581 = vst.msk [vmem:[%s1939_s27 + $0x24] sm:$0xf] %vm426_vm0, %v565_v51  ;;  %v958_v51 = vld [vmem:[%s1935_s6 + $0x58] sm:$0xff] (%p1805_p5)  }
  0xff   : > { %951 = vst [vmem:[%s897_s11 + $0x88] sm:$0xff] (%p1805_p5), %v950_v49  }
 0x100   : > { %v684_v52 = vpop.f32.mrf.mxu2  ;;  %v395_v56 = vpop.f32.mrf.mxu0  ;;  %955 = vst [vmem:[%s897_s11 + $0x90] sm:$0xff] (%p1805_p5), %v954_v50  }
 0x101   : > { %v831_v53 = vpop.f32.mrf.mxu3  ;;  %v711_v54 = vpack.c.bf16 %v684_v52, %v684_v52  ;;  %v541_v57 = vpop.f32.mrf.mxu1  ;;  %v420_v58 = vpack.c.bf16 %v395_v56, %v395_v56  ;;  %959 = vst [vmem:[%s897_s11 + $0x98] sm:$0xff] (%p1805_p5), %v958_v51  }
 0x102   : > { %v858_v55 = vpack.c.bf16 %v831_v53, %v831_v53  ;;  %v566_v59 = vpack.c.bf16 %v541_v57, %v541_v57 }
 0x103   : > { %1501 = vst.msk [vmem:[%s1935_s6 + $0x64] sm:$0xf] %vm426_vm0, %v711_v54 }
 0x104   : > { %1565 = vst.msk [vmem:[%s1939_s27 + $0x64] sm:$0xf] %vm426_vm0, %v858_v55  ;;  %v930_v44 = vld [vmem:[%s1935_s6 + $0x20] sm:$0xff] (%p1805_p5)  }
 0x105   : > { %437 = vst.msk [vmem:[%s1935_s6 + $0x28] sm:$0xf] %vm426_vm0, %v420_v58 }
 0x106   : > { %582 = vst.msk [vmem:[%s1939_s27 + $0x28] sm:$0xf] %vm426_vm0, %v566_v59 }
 0x107   : > { %931 = vst [vmem:[%s897_s11 + $0x20] sm:$0xff] (%p1805_p5), %v930_v44  }
 0x108   : > { %v687_v60 = vpop.f32.mrf.mxu2  ;;  %v397_v0 = vpop.f32.mrf.mxu0 }
 0x109   : > { %v834_v61 = vpop.f32.mrf.mxu3  ;;  %v712_v62 = vpack.c.bf16 %v687_v60, %v687_v60  ;;  %v543_v1 = vpop.f32.mrf.mxu1  ;;  %v421_v2 = vpack.c.bf16 %v397_v0, %v397_v0 }
 0x10a   : > { %v859_v63 = vpack.c.bf16 %v834_v61, %v834_v61  ;;  %v567_v3 = vpack.c.bf16 %v543_v1, %v543_v1  ;;  %v962_v52 = vld [vmem:[%s1935_s6 + $0x60] sm:$0xff] (%p1805_p5)  }
 0x10b   : > { %1502 = vst.msk [vmem:[%s1935_s6 + $0x68] sm:$0xf] %vm426_vm0, %v712_v62 }
 0x10c   : > { %1566 = vst.msk [vmem:[%s1939_s27 + $0x68] sm:$0xf] %vm426_vm0, %v859_v63 }
 0x10d   : > { %438 = vst.msk [vmem:[%s1935_s6 + $0x2c] sm:$0xf] %vm426_vm0, %v421_v2 }
 0x10e   : > { %583 = vst.msk [vmem:[%s1939_s27 + $0x2c] sm:$0xf] %vm426_vm0, %v567_v3 }
 0x10f   : > { %963 = vst [vmem:[%s897_s11 + $0xa0] sm:$0xff] (%p1805_p5), %v962_v52  }
 0x110   : > { %v689_v4 = vpop.f32.mrf.mxu2  ;;  %v400_v8 = vpop.f32.mrf.mxu0 }
 0x111   : > { %v836_v5 = vpop.f32.mrf.mxu3  ;;  %v713_v6 = vpack.c.bf16 %v689_v4, %v689_v4  ;;  %v546_v9 = vpop.f32.mrf.mxu1  ;;  %v422_v10 = vpack.c.bf16 %v400_v8, %v400_v8 }
 0x112   : > { %v860_v7 = vpack.c.bf16 %v836_v5, %v836_v5  ;;  %v568_v11 = vpack.c.bf16 %v546_v9, %v546_v9 }
 0x113   : > { %1503 = vst.msk [vmem:[%s1935_s6 + $0x6c] sm:$0xf] %vm426_vm0, %v713_v6 }
 0x114   : > { %1567 = vst.msk [vmem:[%s1939_s27 + $0x6c] sm:$0xf] %vm426_vm0, %v860_v7  ;;  %v934_v45 = vld [vmem:[%s1935_s6 + $0x28] sm:$0xff] (%p1805_p5)  }
 0x115   : > { %439 = vst.msk [vmem:[%s1935_s6 + $0x30] sm:$0xf] %vm426_vm0, %v422_v10 }
 0x116   : > { %584 = vst.msk [vmem:[%s1939_s27 + $0x30] sm:$0xf] %vm426_vm0, %v568_v11 }
 0x117   : > { %935 = vst [vmem:[%s897_s11 + $0x28] sm:$0xff] (%p1805_p5), %v934_v45  }
 0x118   : > { %v692_v12 = vpop.f32.mrf.mxu2  ;;  %v402_v16 = vpop.f32.mrf.mxu0 }
 0x119   : > { %v839_v13 = vpop.f32.mrf.mxu3  ;;  %v714_v14 = vpack.c.bf16 %v692_v12, %v692_v12  ;;  %v548_v17 = vpop.f32.mrf.mxu1  ;;  %v423_v18 = vpack.c.bf16 %v402_v16, %v402_v16 }
 0x11a   : > { %v861_v15 = vpack.c.bf16 %v839_v13, %v839_v13  ;;  %v569_v19 = vpack.c.bf16 %v548_v17, %v548_v17  ;;  %v966_v53 = vld [vmem:[%s1935_s6 + $0x68] sm:$0xff] (%p1805_p5)  }
 0x11b   : > { %1504 = vst.msk [vmem:[%s1935_s6 + $0x70] sm:$0xf] %vm426_vm0, %v714_v14 }
 0x11c   : > { %1568 = vst.msk [vmem:[%s1939_s27 + $0x70] sm:$0xf] %vm426_vm0, %v861_v15 }
 0x11d   : > { %440 = vst.msk [vmem:[%s1935_s6 + $0x34] sm:$0xf] %vm426_vm0, %v423_v18 }
 0x11e   : > { %585 = vst.msk [vmem:[%s1939_s27 + $0x34] sm:$0xf] %vm426_vm0, %v569_v19 }
 0x11f   : > { %967 = vst [vmem:[%s897_s11 + $0xa8] sm:$0xff] (%p1805_p5), %v966_v53  }
 0x120   : > { %v694_v20 = vpop.f32.mrf.mxu2  ;;  %v405_v24 = vpop.f32.mrf.mxu0 }
 0x121   : > { %v841_v21 = vpop.f32.mrf.mxu3  ;;  %v715_v22 = vpack.c.bf16 %v694_v20, %v694_v20  ;;  %v551_v25 = vpop.f32.mrf.mxu1  ;;  %v424_v26 = vpack.c.bf16 %v405_v24, %v405_v24 }
 0x122   : > { %v862_v23 = vpack.c.bf16 %v841_v21, %v841_v21  ;;  %v570_v27 = vpack.c.bf16 %v551_v25, %v551_v25 }
 0x123   : > { %1505 = vst.msk [vmem:[%s1935_s6 + $0x74] sm:$0xf] %vm426_vm0, %v715_v22 }
 0x124   : > { %1569 = vst.msk [vmem:[%s1939_s27 + $0x74] sm:$0xf] %vm426_vm0, %v862_v23  ;;  %v938_v46 = vld [vmem:[%s1935_s6 + $0x30] sm:$0xff] (%p1805_p5)  }
 0x125   : > { %441 = vst.msk [vmem:[%s1935_s6 + $0x38] sm:$0xf] %vm426_vm0, %v424_v26 }
 0x126   : > { %586 = vst.msk [vmem:[%s1939_s27 + $0x38] sm:$0xf] %vm426_vm0, %v570_v27 }
 0x127   : > { %939 = vst [vmem:[%s897_s11 + $0x30] sm:$0xff] (%p1805_p5), %v938_v46  }
 0x128   : > { %v697_v28 = vpop.f32.mrf.mxu2  ;;  %v407_v32 = vpop.f32.mrf.mxu0 }
 0x129   : > { %v844_v29 = vpop.f32.mrf.mxu3  ;;  %v716_v30 = vpack.c.bf16 %v697_v28, %v697_v28  ;;  %v553_v33 = vpop.f32.mrf.mxu1  ;;  %v425_v34 = vpack.c.bf16 %v407_v32, %v407_v32 }
 0x12a   : > { %v863_v31 = vpack.c.bf16 %v844_v29, %v844_v29  ;;  %v571_v35 = vpack.c.bf16 %v553_v33, %v553_v33  ;;  %v970_v54 = vld [vmem:[%s1935_s6 + $0x70] sm:$0xff] (%p1805_p5)  }
 0x12b   : > { %1506 = vst.msk [vmem:[%s1935_s6 + $0x78] sm:$0xf] %vm426_vm0, %v716_v30 }
 0x12c   : > { %1570 = vst.msk [vmem:[%s1939_s27 + $0x78] sm:$0xf] %vm426_vm0, %v863_v31 }
 0x12d   : > { %442 = vst.msk [vmem:[%s1935_s6 + $0x3c] sm:$0xf] %vm426_vm0, %v425_v34 }
 0x12e   : > { %587 = vst.msk [vmem:[%s1939_s27 + $0x3c] sm:$0xf] %vm426_vm0, %v571_v35 }
 0x12f   : > { %971 = vst [vmem:[%s897_s11 + $0xb0] sm:$0xff] (%p1805_p5), %v970_v54  }
 0x130   : > { %v699_v36 = vpop.f32.mrf.mxu2  ;;  %892 = sbr.rel (!%p1805_p5) target bundleno = 316 (0x13c), region = 36 }
 0x131   : > { %v846_v37 = vpop.f32.mrf.mxu3  ;;  %v717_v38 = vpack.c.bf16 %v699_v36, %v699_v36 }
 0x132   : > { %v864_v39 = vpack.c.bf16 %v846_v37, %v846_v37 }
 0x133   : > { %1507 = vst.msk [vmem:[%s1935_s6 + $0x7c] sm:$0xf] %vm426_vm0, %v717_v38 }
 0x134   : > { %1571 = vst.msk [vmem:[%s1939_s27 + $0x7c] sm:$0xf] %vm426_vm0, %v864_v39  ;;  %v942_v47 = vld [vmem:[%s1935_s6 + $0x38] sm:$0xff] (%p1805_p5)  }
 0x135   : > { %943 = vst [vmem:[%s897_s11 + $0x38] sm:$0xff] %v942_v47  }
 0x13a   : > { %v974_v55 = vld [vmem:[%s1935_s6 + $0x78] sm:$0xff]  }
 0x13b   : > { %975 = vst [vmem:[%s897_s11 + $0xb8] sm:$0xff] %v974_v55  }
 0x13c PF: > { %1065 = sbr.rel (!%p1805_p5) target bundleno = 336 (0x150), region = 77  ;;  %s1578_s12 = sshll.u32 (%p1805_p5), %s1720_s18, 6  ;;  %v1087_v56 = vld [vmem:[%s1939_s27] sm:$0xff] (%p1805_p5)   ;;  %v1091_v57 = vld [vmem:[%s1939_s27 + $0x8] sm:$0xff] (%p1805_p5)   ;;  %v1095_v58 = vld [vmem:[%s1939_s27 + $0x10] sm:$0xff] (%p1805_p5)  }
 0x13d   : > { %s1068_s13 = sadd.s32 (%p1805_p5), %s1578_s12, %s1855_s14  ;;  %v1099_v59 = vld [vmem:[%s1939_s27 + $0x18] sm:$0xff] (%p1805_p5)   ;;  %v1103_v60 = vld [vmem:[%s1939_s27 + $0x20] sm:$0xff] (%p1805_p5)   ;;  %v1107_v61 = vld [vmem:[%s1939_s27 + $0x28] sm:$0xff] (%p1805_p5)  }
 0x13e   : > { %s1579_s7 = sshll.u32 (%p1805_p5), %s1068_s13, 2  ;;  %v1111_v62 = vld [vmem:[%s1939_s27 + $0x30] sm:$0xff] (%p1805_p5)   ;;  %v1115_v63 = vld [vmem:[%s1939_s27 + $0x38] sm:$0xff] (%p1805_p5)   ;;  %v1119_v0 = vld [vmem:[%s1939_s27 + $0x40] sm:$0xff] (%p1805_p5)  }
 0x13f   : > { %s1070_s26 = scalar_lea.vmem (%p1805_p5), %s2138_s4, %s1579_s7  ;;  %v1123_v1 = vld [vmem:[%s1939_s27 + $0x48] sm:$0xff] (%p1805_p5)   ;;  %v1127_v2 = vld [vmem:[%s1939_s27 + $0x50] sm:$0xff] (%p1805_p5)   ;;  %v1131_v3 = vld [vmem:[%s1939_s27 + $0x58] sm:$0xff] (%p1805_p5)  }
 0x140   : > { %1088 = vst [vmem:[%s1070_s26] sm:$0xff] (%p1805_p5), %v1087_v56   ;;  %v1135_v4 = vld [vmem:[%s1939_s27 + $0x60] sm:$0xff] (%p1805_p5)   ;;  %v1139_v5 = vld [vmem:[%s1939_s27 + $0x68] sm:$0xff] (%p1805_p5)   ;;  %v1143_v6 = vld [vmem:[%s1939_s27 + $0x70] sm:$0xff] (%p1805_p5)  }
 0x141   : > { %1092 = vst [vmem:[%s1070_s26 + $0x8] sm:$0xff] %v1091_v57  }
 0x142   : > { %1096 = vst [vmem:[%s1070_s26 + $0x10] sm:$0xff] %v1095_v58   ;;  %v1147_v7 = vld [vmem:[%s1939_s27 + $0x78] sm:$0xff]  }
 0x143   : > { %1100 = vst [vmem:[%s1070_s26 + $0x18] sm:$0xff] %v1099_v59  }
 0x144   : > { %1104 = vst [vmem:[%s1070_s26 + $0x20] sm:$0xff] %v1103_v60  }
 0x145   : > { %1108 = vst [vmem:[%s1070_s26 + $0x28] sm:$0xff] %v1107_v61  }
 0x146   : > { %1112 = vst [vmem:[%s1070_s26 + $0x30] sm:$0xff] %v1111_v62  }
 0x147   : > { %1116 = vst [vmem:[%s1070_s26 + $0x38] sm:$0xff] %v1115_v63  }
 0x148   : > { %1120 = vst [vmem:[%s1070_s26 + $0x80] sm:$0xff] %v1119_v0  }
 0x149   : > { %1124 = vst [vmem:[%s1070_s26 + $0x88] sm:$0xff] %v1123_v1  }
 0x14a   : > { %1128 = vst [vmem:[%s1070_s26 + $0x90] sm:$0xff] %v1127_v2  }
 0x14b   : > { %1132 = vst [vmem:[%s1070_s26 + $0x98] sm:$0xff] %v1131_v3  }
 0x14c   : > { %1136 = vst [vmem:[%s1070_s26 + $0xa0] sm:$0xff] %v1135_v4  }
 0x14d   : > { %1140 = vst [vmem:[%s1070_s26 + $0xa8] sm:$0xff] %v1139_v5  }
 0x14e   : > { %1144 = vst [vmem:[%s1070_s26 + $0xb0] sm:$0xff] %v1143_v6  }
 0x14f   : > { %1148 = vst [vmem:[%s1070_s26 + $0xb8] sm:$0xff] %v1147_v7  }
 0x150 PF: > { %s15_s21 = sadd.s32 1, %s1732_s21   ;;  %s2140_s15 = smov %s1712_s16 }
 0x151   : > { %p12_p11 = scmp.ge.s32.totalorder %s15_s21, 6   ;;  %s2141_s16 = smov %s1816_s30 }
 0x152   : > { %s2142_s17 = smov %s1724_s19  ;;  %s2143_s18 = smov %s1728_s20 }
 0x153   : > { %s2144_s19 = smov %s2147_s22  ;;  %s2145_s20 = smov %s2151_s23 }
 0x154   :  { %14 = sbr.rel (!%p12_p11) target bundleno = 4 (0x4), region = 160 }

</bundles_post_ra>
